<compile_context>
chip_gen: v6e
topology: v6e:2x2x1
jax: 0.10.0
libtpu: 0.0.40
codegen_flags: <defaults>
</compile_context>

<pallas_src>
import math
import numpy as np
import jax
import jax.numpy as jnp
from jax.experimental import pallas as pl
from jax.experimental.pallas import tpu as pltpu


def _round_up(a, b):
    return (a + b - 1) // b * b


def _cdiv(a, b):
    return (a + b - 1) // b


# ----------------------------- Pallas kernels ------------------------------ #

def _sag_score_kernel(xw_ref, adj_ref, const_ref, score_ref, acc_ref):
    """One (row-tile i, k-tile) step of score = tanh((A_norm @ xw) * c0 + c1)."""
    k = pl.program_id(1)

    @pl.when(k == 0)
    def _init():
        acc_ref[...] = jnp.zeros_like(acc_ref)

    # Dominant op: bf16 adjacency tile (TM, TK) @ bf16 xw (TK, 1), f32 accumulation.
    acc_ref[...] += jnp.dot(adj_ref[...], xw_ref[...],
                            preferred_element_type=jnp.float32)

    @pl.when(k == pl.num_programs(1) - 1)
    def _finalize():
        # const_ref (SMEM): [0] = sum(w_pool)/||w_pool||, [1] = bias * [0]
        score_ref[...] = jnp.tanh(acc_ref[...] * const_ref[0] + const_ref[1])


_GATHER_ROWS = 8  # rows of x gathered + scaled per grid step


def _gather_scale_kernel(perm_ref, vals_ref, x_ref, o_ref):
    """o[i*R + r, :] = x[perm[i*R + r], :] * top_score[i*R + r] for r in [0, R)."""
    base = pl.program_id(0) * _GATHER_ROWS
    for r in range(_GATHER_ROWS):
        j = base + r
        row = x_ref[pl.ds(perm_ref[j], 1), :]          # (1, C) dynamic row gather
        o_ref[pl.ds(r, 1), :] = (row * vals_ref[j]).astype(o_ref.dtype)


# ----------------------------- kernel wrappers ------------------------------ #

def _pick_tile_targets():
    """Per-generation adjacency tile targets (bytes/step must dwarf ~0.35us
    grid-step overhead); every choice double-buffers well inside VMEM."""
    try:
        kind = jax.devices()[0].device_kind.lower()
    except Exception:  # pragma: no cover - defensive
        kind = ""
    if "v5" in kind:
        return 512, 2048          # ~2 MiB bf16 tile (HBM ~0.8 TB/s)
    if "v6" in kind:
        return 512, 4096          # ~4 MiB (HBM ~1.4 TB/s)
    return 1024, 4096             # v7x / default: ~8 MiB (HBM ~3.2 TB/s)


def _score_tiling(n, tm_target, tk_target):
    """Pick (TM, TK, padded rows, padded cols): close to the targets, minimal
    zero padding, and >=2 row tiles when possible so the 'parallel' row axis
    can split across v7x's two TensorCores."""
    n8 = _round_up(n, 8)
    n128 = _round_up(n, 128)
    nb_rows = max(_cdiv(n8, tm_target), 2 if n8 >= 16 else 1)
    tm = _round_up(_cdiv(n8, nb_rows), 8)
    n_rows = _round_up(n8, tm)
    nb_cols = max(_cdiv(n128, tk_target), 1)
    tk = _round_up(_cdiv(n128, nb_cols), 128)
    n_cols = _round_up(n128, tk)
    return tm, tk, n_rows, n_cols


def sag_pool_scores(xw_bf16, adj_bf16, consts, *, tm, tk):
    """score = tanh((A_norm @ xw) * c0 + c1), tiled over the bf16 adjacency."""
    n_rows, n_cols = adj_bf16.shape
    return pl.pallas_call(
        _sag_score_kernel,
        out_shape=jax.ShapeDtypeStruct((n_rows, 1), jnp.float32),
        grid=(n_rows // tm, n_cols // tk),
        in_specs=[
            pl.BlockSpec((tk, 1), lambda i, k: (k, 0)),          # xw (hoisted x @ W)
            # NOTE: if DMA is still exposed after tile enlargement, try
            # pipeline_mode=pl.Buffered(3) on this spec.
            pl.BlockSpec((tm, tk), lambda i, k: (i, k)),          # bf16 adjacency tile
            pl.BlockSpec(memory_space=pltpu.MemorySpace.SMEM),    # folded scalars
        ],
        out_specs=pl.BlockSpec((tm, 1), lambda i, k: (i, 0)),
        scratch_shapes=[pltpu.VMEM((tm, 1), jnp.float32)],
        compiler_params=pltpu.CompilerParams(
            dimension_semantics=("parallel", "arbitrary"),
            vmem_limit_bytes=48 * 1024 * 1024),
    )(xw_bf16, adj_bf16, consts)


def gather_scale(x, perm, top_vals):
    """Fused x[perm] * top_vals[:, None], batched 8 rows per grid step.

    x is DMA'd into VMEM once and stays resident; perm / top_vals are
    scalar-prefetched into SMEM. The gathered x[perm] never hits HBM.
    """
    n, c = x.shape
    k = perm.shape[0]
    k_pad = _round_up(max(k, _GATHER_ROWS), _GATHER_ROWS)
    perm_p = jnp.zeros((k_pad,), jnp.int32).at[:k].set(perm.astype(jnp.int32))
    vals_p = jnp.zeros((k_pad,), jnp.float32).at[:k].set(top_vals.astype(jnp.float32))

    grid_spec = pltpu.PrefetchScalarGridSpec(
        num_scalar_prefetch=2,                      # perm, top-k values -> SMEM
        grid=(k_pad // _GATHER_ROWS,),
        in_specs=[
            # full x resident in VMEM across all grid steps (same block index)
            pl.BlockSpec((n, c), lambda i, perm_ref, vals_ref: (0, 0)),
        ],
        out_specs=pl.BlockSpec((_GATHER_ROWS, c),
                               lambda i, perm_ref, vals_ref: (i, 0)),
    )
    out = pl.pallas_call(
        _gather_scale_kernel,
        out_shape=jax.ShapeDtypeStruct((k_pad, c), x.dtype),
        grid_spec=grid_spec,
        compiler_params=pltpu.CompilerParams(
            dimension_semantics=("arbitrary",)),
    )(perm_p, vals_p, x)
    return out[:k]


# ------------------------------- JAX glue ---------------------------------- #

def build_norm_adj_padded(edge_index, num_nodes, n_rows, n_cols,
                          dtype=jnp.bfloat16):
    """Dense D^{-1/2}(A + I)D^{-1/2}, scattered into a pre-padded buffer and
    cast once (GCNConv normalization; aggregation at the target node)."""
    row, col = edge_index[0], edge_index[1]
    loop = jnp.arange(num_nodes, dtype=edge_index.dtype)
    row = jnp.concatenate([row, loop])
    col = jnp.concatenate([col, loop])
    ew = jnp.ones(row.shape, jnp.float32)
    deg = jnp.zeros((num_nodes,), jnp.float32).at[col].add(ew)
    dinv = jax.lax.rsqrt(deg)                      # deg >= 1 (self loops added)
    norm = dinv[row] * ew * dinv[col]
    adj = jnp.zeros((n_rows, n_cols), jnp.float32).at[col, row].add(norm)
    return adj.astype(dtype)


def filter_adj_device(edge_index, edge_attr, perm, num_nodes):
    # TODO(synk): the reference filter_adj compacts to a data-dependent number
    # of edges; output size cannot be static on device, so kept edges are
    # relabeled in place and dropped edges are marked -1 (jit-friendly).
    new_idx = jnp.full((num_nodes,), -1, jnp.int32)
    new_idx = new_idx.at[perm].set(jnp.arange(perm.shape[0], dtype=jnp.int32))
    row = new_idx[edge_index[0]]
    col = new_idx[edge_index[1]]
    keep = (row >= 0) & (col >= 0)
    ei_out = jnp.where(keep[None, :], jnp.stack([row, col]), -1)
    if edge_attr is None:
        ea_out = None
    else:
        mask = keep if edge_attr.ndim == 1 else keep[:, None]
        ea_out = jnp.where(mask, edge_attr, 0)
    return ei_out, ea_out


class SAGPoolPallas:
    def __init__(self, in_channels, ratio=0.8, key=None):
        self.in_channels = in_channels
        self.ratio = ratio
        k1, k2 = jax.random.split(key)
        # GCNConv(in_channels, 1): glorot weight [C, 1], zero bias
        limit = math.sqrt(6.0 / (in_channels + 1))
        self.w_gcn = jax.random.uniform(k1, (in_channels, 1), jnp.float32,
                                        -limit, limit)
        self.b_gcn = jnp.zeros((), jnp.float32)
        # TopKPooling attention weight [1, in_channels]
        bound = 1.0 / math.sqrt(in_channels)
        self.w_pool = jax.random.uniform(k2, (1, in_channels), jnp.float32,
                                         -bound, bound)
        # With attn provided, TopKPooling computes
        #   score = tanh((attn * sum(w_pool)) / ||w_pool||)
        # so the projection folds to two module-constant scalars.
        scale = jnp.sum(self.w_pool) / jnp.sqrt(jnp.sum(self.w_pool ** 2))
        self.consts = jnp.stack([scale, self.b_gcn * scale]).astype(jnp.float32)
        self.tm_target, self.tk_target = _pick_tile_targets()

    def score_nodes(self, x, edge_index):
        """tanh((A_norm @ (x @ W) + b) * c0) for every node, via the Pallas kernel."""
        n = x.shape[0]
        tm, tk, n_rows, n_cols = _score_tiling(n, self.tm_target, self.tk_target)
        # TODO(synk): dense N^2 adjacency; for large sparse graphs replace with
        # an edge-list segment-sum feeding the same tiled matvec kernel.
        adj = build_norm_adj_padded(edge_index, n, n_rows, n_cols)       # bf16, padded
        # xw hoisted out of the kernel: one (N,C)@(C,1) matmul in XLA, cast once.
        xw = jnp.zeros((n_cols, 1), jnp.float32).at[:n].set(
            x.astype(jnp.float32) @ self.w_gcn)
        score = sag_pool_scores(xw.astype(jnp.bfloat16), adj, self.consts,
                                tm=tm, tk=tk)
        return score[:n, 0]

    def __call__(self, x, edge_index, edge_attr=None, batch=None):
        n = x.shape[0]
        if batch is None:
            batch = jnp.zeros((n,), jnp.int32)
        score = self.score_nodes(x, edge_index)                          # [N]
        # TODO(synk): single-graph batch only; per-graph top-k (TopKPooling with
        # a multi-graph `batch`) would need segmented top-k.
        k = int(math.ceil(self.ratio * n))
        top_vals, perm = jax.lax.top_k(score, k)
        x_out = gather_scale(x, perm, top_vals)                          # [k, C]
        batch_out = jnp.take(batch, perm)
        ei_out, ea_out = filter_adj_device(edge_index, edge_attr, perm, n)
        return x_out, ei_out, ea_out, batch_out, perm


# --------------------------------- main ------------------------------------ #

if __name__ == "__main__":
    key = jax.random.PRNGKey(0)
    kx, kp = jax.random.split(key)

    N, C = 16, 8
    x = jax.random.normal(kx, (N, C), dtype=jnp.float32)

    # deterministic undirected ring graph: edges (i -> i+1) and (i+1 -> i)
    src = np.arange(N, dtype=np.int32)
    dst = ((src + 1) % N).astype(np.int32)
    edge_index = jnp.asarray(
        np.stack([np.concatenate([src, dst]), np.concatenate([dst, src])])
    )  # [2, 32]

    pool = SAGPoolPallas(in_channels=C, ratio=0.8, key=kp)
    x_out, ei_out, ea_out, batch_out, perm = pool(x, edge_index)
    jax.block_until_ready((x_out, ei_out, batch_out, perm))

    # ---- correctness spot checks against pure-XLA references ----
    adj_f32 = build_norm_adj_padded(edge_index, N, N, N, dtype=jnp.float32)
    ref_score = jnp.tanh((adj_f32 @ (x @ pool.w_gcn))[:, 0] * pool.consts[0]
                         + pool.consts[1])
    pallas_score = pool.score_nodes(x, edge_index)
    assert float(jnp.max(jnp.abs(pallas_score - ref_score))) < 5e-2  # bf16 adj tol

    ref_x_out = jnp.take(x, perm, axis=0) * pallas_score[perm][:, None]
    assert bool(jnp.allclose(x_out, ref_x_out, atol=1e-5, rtol=1e-5))

    k = int(math.ceil(0.8 * N))
    assert x_out.shape == (k, C)
    assert ei_out.shape == (2, 2 * N)
    assert batch_out.shape == (k,)
    print("KERNEL_OK")
</pallas_src>

<mosaic_0001>
module attributes {stable_mosaic.version = 11 : i64} {
  func.func @_sag_score_kernel(%arg0: i32, %arg1: i32, %arg2: memref<128x1xbf16, #tpu.memory_space<vmem>>, %arg3: memref<8x128xbf16, #tpu.memory_space<vmem>>, %arg4: memref<2xf32, #tpu.memory_space<smem>>, %arg5: memref<8x1xf32, #tpu.memory_space<vmem>>, %arg6: memref<8x1xf32, #tpu.memory_space<vmem>>) attributes {dimension_semantics = [#tpu.dimension_semantics<parallel>, #tpu.dimension_semantics<arbitrary>], iteration_bounds = array<i64: 2, 1>, scalar_prefetch = 0 : i64, scratch_operands = 1 : i64, tpu.core_type = #tpu.core_type<tc>, window_params = [{transform_indices = @transform_0, window_bounds = array<i64: 128, 1>}, {transform_indices = @transform_1, window_bounds = array<i64: 8, 128>}, {transform_indices = @transform_2, window_bounds = array<i64: 2>}, {transform_indices = @transform_3, window_bounds = array<i64: 8, 1>}]} {
    %c0_i32 = arith.constant 0 : i32
    %0 = arith.cmpi eq, %arg1, %c0_i32 : i32
    %1 = arith.extui %0 : i1 to i32
    %c0_i32_0 = arith.constant 0 : i32
    %2 = arith.cmpi ne, %1, %c0_i32_0 : i32
    scf.if %2 {
      %cst_10 = arith.constant 0.000000e+00 : f32
      %12 = vector.broadcast %cst_10 : f32 to vector<8x1xf32>
      %c0_11 = arith.constant 0 : index
      %c0_12 = arith.constant 0 : index
      %13 = vector.load %arg6[%c0_11, %c0_12] : memref<8x1xf32, #tpu.memory_space<vmem>>, vector<8x1xf32>
      tpu.vector_store %arg6[%c0_11, %c0_12], %12 {strides = array<i32>} : memref<8x1xf32, #tpu.memory_space<vmem>>, vector<8x1xf32>,
    } else {
    }
    %c0 = arith.constant 0 : index
    %c0_1 = arith.constant 0 : index
    %3 = vector.load %arg6[%c0, %c0_1] : memref<8x1xf32, #tpu.memory_space<vmem>>, vector<8x1xf32>
    %c0_2 = arith.constant 0 : index
    %c0_3 = arith.constant 0 : index
    %4 = vector.load %arg3[%c0_2, %c0_3] : memref<8x128xbf16, #tpu.memory_space<vmem>>, vector<8x128xbf16>
    %c0_4 = arith.constant 0 : index
    %c0_5 = arith.constant 0 : index
    %5 = vector.load %arg2[%c0_4, %c0_5] : memref<128x1xbf16, #tpu.memory_space<vmem>>, vector<128x1xbf16>
    %cst = arith.constant dense<0.000000e+00> : vector<8x1xf32>
    %6 = tpu.matmul %4, %5, %cst {dimension_numbers = #tpu.dot_dimension_numbers<[1], [0], [0], [1], [0, 0, 1, 1], [], []>} : vector<8x128xbf16>, vector<128x1xbf16>, vector<8x1xf32> -> vector<8x1xf32>
    %7 = arith.addf %3, %6 : vector<8x1xf32>
    %c0_6 = arith.constant 0 : index
    %c0_7 = arith.constant 0 : index
    %8 = vector.load %arg6[%c0_6, %c0_7] : memref<8x1xf32, #tpu.memory_space<vmem>>, vector<8x1xf32>
    tpu.vector_store %arg6[%c0_6, %c0_7], %7 {strides = array<i32>} : memref<8x1xf32, #tpu.memory_space<vmem>>, vector<8x1xf32>,
    %c0_i32_8 = arith.constant 0 : i32
    %9 = arith.cmpi eq, %arg1, %c0_i32_8 : i32
    %10 = arith.extui %9 : i1 to i32
    %c0_i32_9 = arith.constant 0 : i32
    %11 = arith.cmpi ne, %10, %c0_i32_9 : i32
    scf.if %11 {
      %c0_10 = arith.constant 0 : index
      %c0_11 = arith.constant 0 : index
      %12 = vector.load %arg6[%c0_10, %c0_11] : memref<8x1xf32, #tpu.memory_space<vmem>>, vector<8x1xf32>
      %c0_12 = arith.constant 0 : index
      %13 = memref.load %arg4[%c0_12] : memref<2xf32, #tpu.memory_space<smem>>
      %14 = vector.broadcast %13 : f32 to vector<8x1xf32>
      %15 = arith.mulf %12, %14 : vector<8x1xf32>
      %c1 = arith.constant 1 : index
      %16 = memref.load %arg4[%c1] : memref<2xf32, #tpu.memory_space<smem>>
      %17 = vector.broadcast %16 : f32 to vector<8x1xf32>
      %18 = arith.addf %15, %17 : vector<8x1xf32>
      %19 = math.tanh %18 : vector<8x1xf32>
      %c0_13 = arith.constant 0 : index
      %c0_14 = arith.constant 0 : index
      %20 = vector.load %arg5[%c0_13, %c0_14] : memref<8x1xf32, #tpu.memory_space<vmem>>, vector<8x1xf32>
      tpu.vector_store %arg5[%c0_13, %c0_14], %19 {strides = array<i32>} : memref<8x1xf32, #tpu.memory_space<vmem>>, vector<8x1xf32>,
    } else {
    }
    return
  }
  func.func @transform_0(%arg0: i32, %arg1: i32) -> (i32, i32) {
    %c0_i32 = arith.constant 0 : i32
    %c0_i32_0 = arith.constant 0 : i32
    return %arg1, %c0_i32 : i32, i32
  }
  func.func @transform_1(%arg0: i32, %arg1: i32) -> (i32, i32) {
    %c0_i32 = arith.constant 0 : i32
    return %arg0, %arg1 : i32, i32
  }
  func.func @transform_2(%arg0: i32, %arg1: i32) -> i32 {
    %c0_i32 = arith.constant 0 : i32
    %c0_i32_0 = arith.constant 0 : i32
    return %c0_i32 : i32
  }
  func.func @transform_3(%arg0: i32, %arg1: i32) -> (i32, i32) {
    %c0_i32 = arith.constant 0 : i32
    %c0_i32_0 = arith.constant 0 : i32
    return %arg0, %c0_i32 : i32, i32
  }
}

</mosaic_0001>

<bundles_post_ra>
// kernel: tpu_custom_call.1
= control target key start
LH: loop header
LB: loop body
LE: loop exit
PB: predicated region body
PF: predicated region fallthrough
CT: control target
= control target key end

     0   :  { %8 = vsyncpa [#allocation4], 0  ;;  %s608_s12 = smov 0   ;;  %s610_s13 = smov 0   ;;  %s698_s0 = inlined_call_operand.vmem [shape: bf16[128,1], index: 0, kind: input, shape index: {}]   ;;  %s699_s1 = inlined_call_operand.vmem [shape: bf16[16,128], index: 1, kind: input, shape index: {}]   ;;  %s700_s2 = inlined_call_operand.vmem [shape: f32[2], index: 2, kind: input, shape index: {}]   ;;  %s701_s3 = inlined_call_operand.vmem [shape: f32[16,1], index: 3, kind: output, shape index: {}]  }
   0x1   :  { %s612_s14 = smov 0  }
   0x2 LB: > { %s445_s15 = sadd.s32 4294967295, %s583_s14   ;;  %s26_s16 = sadd.s32 1, %s579_s13  ;;  %s583_s14 = sphi %s612_s14, %s14_s14   ;;  %s579_s13 = sphi %s610_s13, %s705_s13   ;;  %s575_s12 = sphi %s608_s12, %s704_s12  }
   0x3   : > { %p28_p0 = scmp.ge.s32.totalorder %s26_s16, 2  ;;  %p447_p1 = scmp.ge.s32.totalorder %s583_s14, 1 }
   0x4   : > { %p132_p2 = scmp.lt.s32.totalorder %s583_s14, 3  ;;  %p633_p4 = scmp.eq.s32.totalorder %s445_s15, 0 }
   0x5   : > { %s707_s16 = smov (%p28_p0, %s26_s16), 0  ;;  %s154_s21 = sshll.u32 %s700_s2, 4  ;;  %s155_s21 = int_to_ptr.vmem [resolvable:$true] %s154_s21 }
   0x6   : > { %p629_p3 = pnand %p447_p1, %p132_p2  ;;  %s542_s22 = scalar_lea.vmem %s155_s21, 16 }
   0x7   : > { %p543_p7 = scmp.ne.s32.totalorder %s155_s21, %s542_s22  ;;  %p550_p11 = scmp.lt.s32.totalorder %s155_s21, %s155_s21 }
   0x8   : > { %p499_p5 = pneg %p629_p3  ;;  %p551_p12 = scmp.lt.s32.totalorder %s542_s22, %s542_s22 }
   0xa   : > { %p500_p6 = pnand %p633_p4, %p499_p5  ;;  %p552_p13 = por %p551_p12, %p550_p11 }
   0xc   : > { %p544_p8 = pneg %p500_p6 }
   0xe   : > { %p545_p9 = pnand %p544_p8, %p543_p7 }
  0x10   : > { %p546_p10 = pneg %p545_p9 }
  0x12   : > { %p553_p0 = pnand %p552_p13, %p546_p10 }
  0x14   : > { %556 = shalt.err (!%p553_p0)
}
  0x15   : > { %s585_s23 = smov [#allocation3]   ;;  %177 = sbr.rel (%p629_p3) target bundleno = 284 (0x11c), region = 32 }
  0x16   : > { %502 = dma.vmem_to_smem (!%p500_p6), %s155_s21, 16, %s585_s23, [#allocation4]  }
  0x1a   : > { %570 = dma.done.wait (%p633_p4), [#allocation4], 16  }
  0x1b   : > { %572 = vsyncadd (%p633_p4), [#allocation4], 4294967280 }
  0x1c   : > { %183 = sfence }
  0x1d   : > { %v532_v0 = vld [vmem:[%s698_s0 + $0x38] sm:$0xff]   ;;  %v586_v1 = vmov 0.0   ;;  %v533_v2 = vld [vmem:[%s698_s0 + $0x30] sm:$0xff]   ;;  %vm587_vm0 = vmmov 0   ;;  %vm230_vm1 = vcmask 7168   ;;  %v534_v3 = vld [vmem:[%s698_s0 + $0x28] sm:$0xff]  }
  0x1e   : > { %475 = vmatprep.subr.bf16.mxu0 %v586_v1  ;;  %491 = vmatprep.mubr.msk.bf16.mxu0 %vm587_vm0, %v586_v1  ;;  %231 = vst.msk [vmem:[#allocation2] sm:$0xff] %vm230_vm1, %v586_v1  ;;  %v535_v4 = vld [vmem:[%s698_s0 + $0x20] sm:$0xff]   ;;  %v536_v5 = vld [vmem:[%s698_s0 + $0x18] sm:$0xff]   ;;  %p214_p1 = scmp.lt.s32.totalorder %s575_s12, 1  ;;  %v537_v6 = vld [vmem:[%s698_s0 + $0x10] sm:$0xff]   ;;  %s345_s21 = sld [smem:[#allocation3]] }
  0x1f   : > { %476 = vmatpush3.bf16.msra.mxu0 %v532_v0  ;;  %v538_v7 = vld [vmem:[%s698_s0 + $0x8] sm:$0xff]   ;;  %v539_v8 = vld [vmem:[%s698_s0] sm:$0xff]   ;;  %s463_s22 = sld [smem:[#allocation3 + $0x1]] }
  0x20   : > { %477 = vmatprep.subr.bf16.mxu0 %v586_v1  ;;  %s709_s12 = smov (!%p214_p1, %s575_s12), 1 }
  0x21   : > { %s453_s11 = sshll.u32 %s709_s12, 2  ;;  %s454_s23 = sshll.u32 %s709_s12, 3 }
  0x22   : > { %s220_s20 = scalar_lea.vmem %s699_s1, %s453_s11  ;;  %s224_s26 = scalar_lea.vmem %s701_s3, %s454_s23 }
  0x23   : > { %478 = vmatpush3.bf16.msra.mxu0 %v533_v2  ;;  %v233_v9 = vld [vmem:[%s220_s20] sm:$0xf] }
  0x24   : > { %479 = vmatprep.subr.bf16.mxu0 %v586_v1  ;;  %v346_v16 = vstv %s345_s21 }
  0x25   : > { %v232_v10 = vld [vmem:[#allocation2] sm:$0xff]  ;;  %v349_v18 = vstv %s463_s22 }
  0x27   : > { %480 = vmatpush3.bf16.msra.mxu0 %v534_v3 }
  0x28   : > { %481 = vmatprep.subr.bf16.mxu0 %v586_v1 }
  0x2b   : > { %482 = vmatpush3.bf16.msra.mxu0 %v535_v4 }
  0x2c   : > { %483 = vmatprep.subr.bf16.mxu0 %v586_v1 }
  0x2f   : > { %484 = vmatpush3.bf16.msra.mxu0 %v536_v5 }
  0x30   : > { %485 = vmatprep.subr.bf16.mxu0 %v586_v1 }
  0x33   : > { %486 = vmatpush3.bf16.msra.mxu0 %v537_v6 }
  0x34   : > { %487 = vmatprep.subr.bf16.mxu0 %v586_v1 }
  0x37   : > { %488 = vmatpush3.bf16.msra.mxu0 %v538_v7 }
  0x38   : > { %489 = vmatprep.subr.bf16.mxu0 %v586_v1 }
  0x3b   : > { %490 = vmatpush3.bf16.msra.mxu0 %v539_v8 }
  0x3e   : > { %492 = vmatmul.mubr.bf16.vlgmr.msra.gmra.mxu0 %v233_v9 }
  0xfe   : > { %v332_v11 = vpop.f32.mrf.mxu0 }
  0xff   : > { %v338_v12 = vadd.f32 %v332_v11, %v232_v10 }
 0x100   : > { %v493_v13 = vpop.f32.mrf.mxu0 }
 0x101   : > { %340 = vst.msk [vmem:[#allocation2] sm:$0xff] %vm230_vm1, %v338_v12 }
 0x102   : > { %v335_v14 = vpop.f32.mrf.mxu0 }
 0x104   : > { %v494_v15 = vpop.f32.mrf.mxu0 }
 0x108   : > { %v344_v17 = vld [vmem:[#allocation2] sm:$0xff] }
 0x109   : > { %v347_v19 = vmul.f32 %v346_v16, %v344_v17 }
 0x10b   : > { %v350_v20 = vadd.f32 %v349_v18, %v347_v19 }
 0x10d   : > { %540 = vtanh.f32 %v350_v20 }
 0x11a   : > { %v541_v21 = vpop.eup %540 }
 0x11b   : > { %352 = vst.msk [vmem:[%s224_s26] sm:$0xff] %vm230_vm1, %v541_v21 }
 0x11c PF: > { %s14_s14 = sadd.s32 1, %s583_s14   ;;  %s704_s12 = smov %s579_s13 }
 0x11d   : > { %p11_p2 = scmp.ge.s32.totalorder %s14_s14, 4   ;;  %s705_s13 = smov %s707_s16 }
 0x11f   :  { %13 = sbr.rel (!%p11_p2) target bundleno = 2 (0x2), region = 78 }
 0x124   :  { %372 = vsyncpa [#allocation4], 1 }
 0x125   :  { %374 = vsyncpa [#allocation4 + $0x1], 1 }

</bundles_post_ra>
